<compile_context>
chip_gen: v7x
topology: tpu7x:2x2x1
jax: 0.10.0
libtpu: 0.0.40
codegen_flags: <defaults>
</compile_context>

<pallas_src>
import jax
import jax.numpy as jnp
from jax.experimental import pallas as pl
from jax.experimental.pallas import tpu as pltpu

_LANE = 128


def _round_up(v: int, m: int) -> int:
    return -(-v // m) * m


def _cdiv(a: int, b: int) -> int:
    return -(-a // b)


def _tile_budget():
    """Best-effort generation tuning; conservative fallbacks if query fails."""
    target = 8 << 20        # ~8 MiB x tile (double-buffered ~35 MiB: v7x-safe)
    vmem_cap = 48 << 20     # explicit scoped-VMEM limit (v7x physical is 64 MiB)
    try:
        info = pltpu.get_tpu_info()
        phys = getattr(info, "vmem_capacity_bytes", None)
        if phys is not None and phys >= (96 << 20):
            # v5e / v6e: 128 MiB physical VMEM -> roomier tiles and limit.
            target = 16 << 20
            vmem_cap = 80 << 20
    except Exception:
        pass
    return target, vmem_cap


def _pooling_weight_kernel(w_ref, x_ref, o_ref):
    # w_ref: (1, 1, l_tile); x_ref / o_ref: (1, c_tile, l_tile)
    # jnp broadcasting does the channel-dim broadcast in-register.
    o_ref[...] = w_ref[...] * x_ref[...]


def pooling_weight_forward(weights: jax.Array, x: jax.Array) -> jax.Array:
    """weights: (B, 1, N, ns); x: (B, C, N, ns) -> (B, C, N, ns)."""
    B, C, N, ns = x.shape
    assert weights.shape == (B, 1, N, ns), (weights.shape, x.shape)

    L = N * ns
    itemsize = jnp.dtype(x.dtype).itemsize

    # Lane-dense layout: flatten the trailing (N, ns) dims (contiguous reshape,
    # a layout no-op for XLA).
    x2 = x.reshape(B, C, L)
    w2 = weights.reshape(B, 1, L)

    # Channel tile honours the dtype's sublane packing: (8,128) f32,
    # (16,128) bf16, (32,128) int8/fp8.
    sublane_pack = {4: 8, 2: 16, 1: 32}.get(itemsize, 8)
    if C <= sublane_pack:
        c_tile = C                                   # full extent: always legal
    else:
        c_tile = min(32, _round_up(C, sublane_pack)) # packed multiple, edge masked

    target_bytes, vmem_cap = _tile_budget()

    # Lane tile: full extent when it fits the byte budget (no masking at all),
    # otherwise a multiple of 128 with a masked partial edge block.
    if L <= _LANE:
        l_tile = L
    else:
        max_l = max(_LANE, (target_bytes // (c_tile * itemsize)) // _LANE * _LANE)
        l_tile = L if L <= max_l else max_l
        # Keep the grid splittable across v7x's two TensorCores.
        while B * _cdiv(C, c_tile) * _cdiv(L, l_tile) < 4 and l_tile > _LANE:
            l_tile = max(_LANE, _round_up(l_tile // 2, _LANE))

    n_l = _cdiv(L, l_tile)
    n_c = _cdiv(C, c_tile)
    # Channel-block axis innermost: weight block index (b, 0, l) is constant
    # across consecutive steps, so its DMA is issued once per (b, l).
    grid = (B, n_l, n_c)

    # VMEM budget: double-buffered (weight strip + x + out) tiles plus headroom.
    tile_bytes = (l_tile + 2 * c_tile * l_tile) * itemsize
    vmem_bytes = int(min(max(2 * tile_bytes + (4 << 20), 16 << 20), vmem_cap))

    cost = pl.CostEstimate(
        flops=B * C * L,
        transcendentals=0,
        bytes_accessed=(2 * B * C * L + B * L) * itemsize,
    )

    out = pl.pallas_call(
        _pooling_weight_kernel,
        out_shape=jax.ShapeDtypeStruct((B, C, L), x.dtype),
        grid=grid,
        in_specs=[
            # weights: one lane-dense strip per (batch, L-block); broadcast over
            # the channel grid axis and reused across its steps.
            pl.BlockSpec((1, 1, l_tile), lambda b, l, c: (b, 0, l)),
            # x: (batch, channel-block, L-block) tile.
            pl.BlockSpec((1, c_tile, l_tile), lambda b, l, c: (b, c, l)),
        ],
        out_specs=pl.BlockSpec((1, c_tile, l_tile), lambda b, l, c: (b, c, l)),
        compiler_params=pltpu.CompilerParams(
            dimension_semantics=("parallel", "parallel", "parallel"),
            vmem_limit_bytes=vmem_bytes,
        ),
        cost_estimate=cost,
    )(w2, x2)

    return out.reshape(B, C, N, ns)


if __name__ == "__main__":
    # Small shapes consistent with the module: (B, C, N, ns)
    B, C, N, ns = 2, 4, 16, 16

    key = jax.random.PRNGKey(0)
    kx, kw = jax.random.split(key)
    x = jax.random.normal(kx, (B, C, N, ns), dtype=jnp.float32)

    # init_weights(): weights = ones([B, 1, N, ns]) (deterministic init).
    weights = jnp.ones((B, 1, N, ns), dtype=jnp.float32)
    out = jax.block_until_ready(pooling_weight_forward(weights, x))
    ref = weights * x
    assert out.shape == (B, C, N, ns)
    assert jnp.allclose(out, ref, atol=1e-6, rtol=1e-6), "mismatch vs reference"

    # Weights are trainable in the original module, so they need not stay 1:
    # exercise the in-kernel channel broadcast with non-trivial weights.
    weights2 = jax.random.normal(kw, (B, 1, N, ns), dtype=jnp.float32)
    out2 = jax.block_until_ready(pooling_weight_forward(weights2, x))
    assert jnp.allclose(out2, weights2 * x, atol=1e-6, rtol=1e-6), "broadcast mismatch"

    # Non-tile-divisible shape: exercises the pad-free full-extent/edge path.
    B3, C3, N3, ns3 = 2, 5, 13, 9
    x3 = jax.random.normal(kx, (B3, C3, N3, ns3), dtype=jnp.float32)
    w3 = jax.random.normal(kw, (B3, 1, N3, ns3), dtype=jnp.float32)
    out3 = jax.block_until_ready(pooling_weight_forward(w3, x3))
    assert jnp.allclose(out3, w3 * x3, atol=1e-6, rtol=1e-6), "odd-shape mismatch"

    print("KERNEL_OK")
</pallas_src>

<mosaic_0001>
module attributes {stable_mosaic.version = 11 : i64} {
  func.func @_pooling_weight_kernel(%arg0: i32, %arg1: i32, %arg2: i32, %arg3: memref<1x1x128xf32, #tpu.memory_space<vmem>>, %arg4: memref<1x4x128xf32, #tpu.memory_space<vmem>>, %arg5: memref<1x4x128xf32, #tpu.memory_space<vmem>>) attributes {dimension_semantics = [#tpu.dimension_semantics<parallel>, #tpu.dimension_semantics<parallel>, #tpu.dimension_semantics<parallel>], iteration_bounds = array<i64: 2, 2, 1>, scalar_prefetch = 0 : i64, scratch_operands = 0 : i64, tpu.core_type = #tpu.core_type<tc>, window_params = [{transform_indices = @transform_0, window_bounds = array<i64: 1, 1, 128>}, {transform_indices = @transform_1, window_bounds = array<i64: 1, 4, 128>}, {transform_indices = @transform_2, window_bounds = array<i64: 1, 4, 128>}]} {
    %c0 = arith.constant 0 : index
    %c0_0 = arith.constant 0 : index
    %c0_1 = arith.constant 0 : index
    %0 = vector.load %arg3[%c0, %c0_0, %c0_1] : memref<1x1x128xf32, #tpu.memory_space<vmem>>, vector<1x1x128xf32>
    %c0_2 = arith.constant 0 : index
    %c0_3 = arith.constant 0 : index
    %c0_4 = arith.constant 0 : index
    %1 = vector.load %arg4[%c0_2, %c0_3, %c0_4] : memref<1x4x128xf32, #tpu.memory_space<vmem>>, vector<1x4x128xf32>
    %2 = vector.broadcast %0 : vector<1x1x128xf32> to vector<1x4x128xf32>
    %3 = arith.mulf %2, %1 : vector<1x4x128xf32>
    %c0_5 = arith.constant 0 : index
    %c0_6 = arith.constant 0 : index
    %c0_7 = arith.constant 0 : index
    %4 = vector.load %arg5[%c0_5, %c0_6, %c0_7] : memref<1x4x128xf32, #tpu.memory_space<vmem>>, vector<1x4x128xf32>
    tpu.vector_store %arg5[%c0_5, %c0_6, %c0_7], %3 {strides = array<i32>} : memref<1x4x128xf32, #tpu.memory_space<vmem>>, vector<1x4x128xf32>,
    return
  }
  func.func @transform_0(%arg0: i32, %arg1: i32, %arg2: i32) -> (i32, i32, i32) {
    %c0_i32 = arith.constant 0 : i32
    %c0_i32_0 = arith.constant 0 : i32
    return %arg0, %c0_i32, %arg1 : i32, i32, i32
  }
  func.func @transform_1(%arg0: i32, %arg1: i32, %arg2: i32) -> (i32, i32, i32) {
    %c0_i32 = arith.constant 0 : i32
    return %arg0, %arg2, %arg1 : i32, i32, i32
  }
  func.func @transform_2(%arg0: i32, %arg1: i32, %arg2: i32) -> (i32, i32, i32) {
    %c0_i32 = arith.constant 0 : i32
    return %arg0, %arg2, %arg1 : i32, i32, i32
  }
}

</mosaic_0001>

<bundles_post_ra>
// kernel: tpu_custom_call.1
= control target key start
LH: loop header
LB: loop body
LE: loop exit
PB: predicated region body
PF: predicated region fallthrough
CT: control target
= control target key end

     0   :  { %7 = vsyncpa [#allocation3], 0  ;;  %s893_s0 = inlined_call_operand.hbm [shape: f32[2,1,256], index: 0, kind: input, shape index: {}]   ;;  %s894_s1 = inlined_call_operand.hbm [shape: f32[2,4,256], index: 1, kind: input, shape index: {}]   ;;  %s895_s2 = inlined_call_operand.hbm [shape: f32[2,4,256], index: 2, kind: output, shape index: {}]  }
   0x1   :  { %9 = vsyncpa [#allocation3 + $0x1], 0 }
   0x2   :  { %10 = vsyncpa [#allocation6], 0 }
   0x3   :  { %12 = vsyncpa [#allocation6 + $0x1], 0 }
   0x4   :  { %13 = vsyncpa [#allocation4], 0 }
   0x5   :  { %15 = vsyncpa [#allocation4 + $0x1], 0  ;;  %s653_s9 = smov 0   ;;  %s655_s10 = smov 0  }
   0x6   :  { %s657_s11 = smov 0   ;;  %s659_s12 = smov 0  }
   0x7   :  { %s661_s13 = smov 0   ;;  %s663_s14 = smov 0  }
   0x8   :  { %s665_s15 = smov 0   ;;  %s667_s16 = smov 0  }
   0x9 LB: > { %s370_s17 = sadd.s32 4294967295, %s633_s16   ;;  %s371_s18 = sadd.s32 4294967294, %s633_s16   ;;  %s633_s16 = sphi %s667_s16, %s21_s16   ;;  %s629_s15 = sphi %s665_s15, %s916_s15   ;;  %s625_s14 = sphi %s663_s14, %s915_s14   ;;  %s621_s13 = sphi %s661_s13, %s914_s13   ;;  %s617_s12 = sphi %s659_s12, %s913_s12   ;;  %s613_s11 = sphi %s657_s11, %s912_s11   ;;  %s609_s10 = sphi %s655_s10, %s911_s10   ;;  %s605_s9 = sphi %s653_s9, %s910_s9  }
   0xa   : > { %s36_s19 = sadd.s32 1, %s625_s14  ;;  %s40_s20 = sadd.s32 1, %s629_s15 }
   0xb   : > { %p38_p0 = scmp.ge.s32.totalorder %s36_s19, 2  ;;  %s49_s21 = sadd.s32 1, %s613_s11 }
   0xc   : > { %p56_p1 = scmp.ne.s32.totalorder %s613_s11, %s609_s10  ;;  %p57_p2 = scmp.eq.s32.totalorder %s633_s16, 0 }
   0xd   : > { %s918_s19 = smov (%p38_p0, %s36_s19), 0  ;;  %s920_s20 = smov (!%p38_p0, %s40_s20), %s629_s15 }
   0xe   : > { %s45_s22 = ssub.s32 %s625_s14, %s918_s19  ;;  %p706_p3 = por %p57_p2, %p56_p1 }
   0xf   : > { %p42_p4 = scmp.ge.s32.totalorder %s920_s20, 2  ;;  %p62_p5 = scmp.ne.s32.totalorder %s609_s10, %s605_s9 }
  0x10   : > { %p63_p6 = scmp.eq.s32.totalorder %s370_s17, 0  ;;  %p120_p7 = scmp.eq.s32.totalorder %s370_s17, 3 }
  0x11   : > { %s922_s20 = smov (%p42_p4, %s920_s20), 0  ;;  %p126_p10 = scmp.eq.s32.totalorder %s371_s18, 3 }
  0x12   : > { %p714_p8 = por %p63_p6, %p62_p5  ;;  %p718_p9 = por %p120_p7, %p56_p1 }
  0x13   : > { %s44_s26 = ssub.s32 %s629_s15, %s922_s20  ;;  %p724_p12 = por %p126_p10, %p62_p5 }
  0x14   : > { %s899_s24 = scalar_select %p714_p8, 1, 0 }
  0x15   : > { %s900_s25 = scalar_select %p718_p9, 1, 0 }
  0x16   : > { %s46_s27 = sor.u32 %s45_s22, %s44_s26  ;;  %p405_p13 = scmp.lt.s32.totalorder %s633_s16, 4 }
  0x17   : > { %p47_p11 = scmp.eq.s32.totalorder %s46_s27, 0  ;;  %s730_s29 = sand.u32 1, %s613_s11  }
  0x18   : > { %s901_s28 = scalar_select %p724_p12, 1, 0 }
  0x19   : > { %s733_s30 = scalar_select %p47_p11, %s613_s11, %s49_s21  }
  0x1a   : > { %s374_s3 = sshll.u32 %s629_s15, 1  ;;  %s149_s4 = scalar_lea.vmem [#allocation2], %s730_s29 }
  0x1b   : > { %s158_s5 = sshll.u32 %s149_s4, 4  ;;  %s738_s6 = sadd.s32 %s625_s14, %s374_s3  ;;  %s740_s5 = int_to_ptr.vmem [resolvable:$true] %s158_s5 }
  0x1c   : > { %s375_s7 = sshll.u32 %s738_s6, 4  ;;  %p745_p0 = pnand %p405_p13, %p706_p3 }
  0x1d   : > { %s752_s21 = scalar_lea.hbm %s893_s0, %s375_s7  ;;  %s147_s22 = scalar_lea.sflag [#allocation3], %s730_s29 }
  0x1e   : > { %s471_s26 = scalar_lea.hbm %s752_s21, 16  ;;  %p473_p3 = pneg %p745_p0 }
  0x1f   : > { %p472_p4 = scmp.ne.s32.totalorder %s752_s21, %s471_s26  ;;  %s476_s3 = scalar_lea.hbm %s893_s0, 64 }
  0x20   : > { %p477_p7 = scmp.lt.u32.totalorder %s752_s21, %s893_s0  ;;  %p478_p10 = scmp.lt.u32.totalorder %s476_s3, %s471_s26 }
  0x21   : > { %p474_p5 = pnand %p473_p3, %p472_p4  ;;  %p480_p13 = scmp.lt.u32.totalorder %s471_s26, %s752_s21 }
  0x22   : > { %p479_p11 = por %p478_p10, %p477_p7 }
  0x23   : > { %p475_p6 = pneg %p474_p5 }
  0x24   : > { %p481_p1 = por %p480_p13, %p479_p11 }
  0x26   : > { %p482_p2 = pnand %p481_p1, %p475_p6 }
  0x28   : > { %485 = shalt.err (!%p482_p2)
}
  0x29   : > { %s486_s17 = scalar_lea.vmem %s740_s5, 16  ;;  %s635_s18 = smov [#allocation2]  }
  0x2a   : > { %p487_p4 = scmp.ne.s32.totalorder %s740_s5, %s486_s17  ;;  %s491_s23 = sshll.u32 %s635_s18, 4  ;;  %s492_s23 = int_to_ptr.vmem [resolvable:$false] %s491_s23 }
  0x2b   : > { %s493_s27 = scalar_lea.vmem %s492_s23, 32  ;;  %p494_p9 = scmp.lt.s32.totalorder %s740_s5, %s492_s23 }
  0x2c   : > { %p489_p5 = pnand %p487_p4, %p473_p3  ;;  %p495_p7 = scmp.lt.s32.totalorder %s493_s27, %s486_s17 }
  0x2e   : > { %p490_p12 = pneg %p489_p5  ;;  %p496_p10 = por %p495_p7, %p494_p9 }
  0x30   : > { %p497_p11 = pnand %p496_p10, %p490_p12 }
  0x32   : > { %500 = shalt.err (!%p497_p11)
}
  0x33   : > { %397 = dma.hbm_to_vmem [thread:$0]  (!%p745_p0), %s752_s21, 16, %s740_s5, %s147_s22  }
  0x34   : > { %p903_p1 = scmp.lt.s32.totalorder %s633_s16, 5  ;;  %p904_p2 = scmp.ge.s32.totalorder %s633_s16, 1 }
  0x35   : > { %s376_s3 = sshll.u32 %s730_s29, 2  ;;  %s378_s4 = sshll.u32 %s738_s6, 6 }
  0x36   : > { %p786_p6 = pnand %p904_p2, %p903_p1  ;;  %s795_s18 = scalar_lea.hbm %s894_s1, %s378_s4 }
  0x37   : > { %s169_s23 = scalar_lea.vmem [#allocation5], %s376_s3  ;;  %s166_s5 = scalar_lea.sflag [#allocation6], %s730_s29 }
  0x38   : > { %s905_s26 = scalar_select %p786_p6, 1, 0 }
  0x39   : > { %s180_s27 = sshll.u32 %s169_s23, 4  ;;  %s501_s21 = scalar_lea.hbm %s795_s18, 64  ;;  %s181_s27 = int_to_ptr.vmem [resolvable:$true] %s180_s27 }
  0x3a   : > { %p502_p9 = scmp.ne.s32.totalorder %s795_s18, %s501_s21  ;;  %s506_s7 = scalar_lea.hbm %s894_s1, 256 }
  0x3b   : > { %p507_p4 = scmp.lt.u32.totalorder %s795_s18, %s894_s1  ;;  %p508_p5 = scmp.lt.u32.totalorder %s506_s7, %s501_s21 }
  0x3c   : > { %p504_p12 = pnand %p502_p9, %p473_p3  ;;  %p510_p10 = scmp.lt.u32.totalorder %s501_s21, %s795_s18 }
  0x3d   : > { %p509_p7 = por %p508_p5, %p507_p4 }
  0x3e   : > { %p505_p13 = pneg %p504_p12 }
  0x3f   : > { %p511_p11 = por %p510_p10, %p509_p7 }
  0x41   : > { %p512_p1 = pnand %p511_p11, %p505_p13 }
  0x43   : > { %515 = shalt.err (!%p512_p1)
}
  0x44   : > { %s516_s29 = scalar_lea.vmem %s181_s27, 64  ;;  %s636_s3 = smov [#allocation5]  }
  0x45   : > { %p517_p2 = scmp.ne.s32.totalorder %s181_s27, %s516_s29  ;;  %s521_s23 = sshll.u32 %s636_s3, 4  ;;  %s522_s23 = int_to_ptr.vmem [resolvable:$false] %s521_s23 }
  0x46   : > { %s523_s6 = scalar_lea.vmem %s522_s23, 128  ;;  %p524_p8 = scmp.lt.s32.totalorder %s181_s27, %s522_s23 }
  0x47   : > { %p519_p9 = pnand %p517_p2, %p473_p3  ;;  %p525_p6 = scmp.lt.s32.totalorder %s523_s6, %s516_s29 }
  0x49   : > { %p520_p12 = pneg %p519_p9  ;;  %p526_p4 = por %p525_p6, %p524_p8 }
  0x4b   : > { %p527_p5 = pnand %p526_p4, %p520_p12 }
  0x4d   : > { %530 = shalt.err (!%p527_p5)
}
  0x4e   : > { %400 = dma.hbm_to_vmem [thread:$0]  (!%p745_p0), %s795_s18, 64, %s181_s27, %s166_s5  }
  0x4f   : > { %p906_p13 = scmp.ne.s32.totalorder %s905_s26, 0 }
  0x50   : > { %s820_s21 = sand.u32 (!%p906_p13), 1, %s609_s10   ;;  %p907_p3 = scmp.ne.s32.totalorder (!%p906_p13), %s899_s24, 0 }
  0x51   : > { %189 = sbr.rel (%p906_p13) target bundleno = 119 (0x77), region = 28  ;;  %s192_s22 = scalar_lea.sflag (!%p906_p13), [#allocation3], %s820_s21 }
  0x52   : > { %s194_s7 = scalar_lea.vmem (!%p906_p13), [#allocation2], %s820_s21 }
  0x58   : > { %592 = dma.done.wait (%p907_p3), %s192_s22, 16  }
  0x59   : > { %594 = vsyncadd (%p907_p3), %s192_s22, 4294967280  ;;  %s380_s8 = sshll.u32 %s820_s21, 2  ;;  %s200_s18 = scalar_lea.sflag [#allocation6], %s820_s21 }
  0x5a   : > { %s203_s26 = scalar_lea.vmem [#allocation5], %s380_s8 }
  0x5b   : > { %596 = dma.done.wait (%p907_p3), %s200_s18, 64  }
  0x5c   : > { %598 = vsyncadd (%p907_p3), %s200_s18, 4294967232  ;;  %s384_s27 = sshll.u32 %s621_s13, 1  ;;  %s227_s4 = scalar_lea.vmem [#allocation7], %s380_s8  ;;  %v382_v0 = vld [vmem:[%s194_s7] ss:$0 sm:$0xff] }
  0x5d   : > { %s252_s5 = sadd.s32 %s617_s12, %s384_s27  ;;  %s256_s17 = sshll.u32 %s227_s4, 4  ;;  %v229_v1 = vld [vmem:[%s203_s26] sm:$0xf]  ;;  %s836_s17 = int_to_ptr.vmem [resolvable:$true] %s256_s17 }
  0x5e   : > { %s385_s29 = sshll.u32 %s252_s5, 6  ;;  %v236_v2 = vmul.f32 %v382_v0, %v229_v1  ;;  %s239_s6 = scalar_lea.sflag [#allocation4], %s820_s21 }
  0x5f   : > { %s841_s24 = scalar_lea.hbm %s895_s2, %s385_s29  ;;  %s531_s13 = scalar_lea.vmem %s836_s17, 64 }
  0x60   : > { %237 = vst [vmem:[%s227_s4] sm:$0xf] %v236_v2  ;;  %p532_p8 = scmp.ne.s32.totalorder %s836_s17, %s531_s13  ;;  %p908_p0 = scmp.ne.s32.totalorder %s900_s25, 0 }
  0x61   : > { %s637_s12 = smov [#allocation7]  }
  0x62   : > { %p533_p6 = pnand %p532_p8, %p908_p0  ;;  %s535_s22 = sshll.u32 %s637_s12, 4  ;;  %s536_s22 = int_to_ptr.vmem [resolvable:$false] %s535_s22 }
  0x63   : > { %s537_s7 = scalar_lea.vmem %s536_s22, 128  ;;  %p538_p10 = scmp.lt.s32.totalorder %s836_s17, %s536_s22 }
  0x64   : > { %p534_p7 = pneg %p533_p6  ;;  %p539_p11 = scmp.lt.s32.totalorder %s537_s7, %s531_s13 }
  0x66   : > { %p540_p1 = por %p539_p11, %p538_p10 }
  0x68   : > { %p541_p2 = pnand %p540_p1, %p534_p7 }
  0x6a   : > { %544 = shalt.err (!%p541_p2)
}
  0x6b   : > { %s545_s21 = scalar_lea.hbm %s841_s24, 64  ;;  %s549_s26 = scalar_lea.hbm %s895_s2, 256 }
  0x6c   : > { %p546_p9 = scmp.ne.s32.totalorder %s841_s24, %s545_s21  ;;  %p550_p5 = scmp.lt.u32.totalorder %s841_s24, %s895_s2 }
  0x6d   : > { %p551_p13 = scmp.lt.u32.totalorder %s549_s26, %s545_s21  ;;  %p553_p8 = scmp.lt.u32.totalorder %s545_s21, %s841_s24 }
  0x6e   : > { %p547_p12 = pnand %p546_p9, %p908_p0 }
  0x6f   : > { %p552_p3 = por %p551_p13, %p550_p5 }
  0x70   : > { %p548_p4 = pneg %p547_p12 }
  0x71   : > { %p554_p6 = por %p553_p8, %p552_p3 }
  0x73   : > { %p555_p7 = pnand %p554_p6, %p548_p4 }
  0x75   : > { %558 = shalt.err (!%p555_p7)
}
  0x76   : > { %392 = dma.vmem_to_hbm [thread:$0]  (%p908_p0), %s836_s17, 64, %s841_s24, %s239_s6  }
  0x77 PF: > { %p406_p10 = scmp.ge.s32.totalorder %s633_s16, 2  ;;  %s268_s4 = sand.u32 1, %s605_s9  }
  0x78   : > { %p909_p11 = scmp.ne.s32.totalorder %s901_s28, 0  ;;  %s269_s29 = scalar_lea.sflag [#allocation4], %s268_s4 }
  0x7a   : > { %p402_p1 = pnand %p406_p10, %p909_p11 }
  0x7c   : > { %600 = dma.done.wait (!%p402_p1), %s269_s29, 64  }
  0x7d   : > { %602 = vsyncadd (!%p402_p1), %s269_s29, 4294967232  ;;  %s21_s16 = sadd.s32 1, %s633_s16   ;;  %s910_s9 = smov %s609_s10 }
  0x7e   : > { %p18_p2 = scmp.ge.s32.totalorder %s21_s16, 6   ;;  %s911_s10 = smov %s613_s11 }
  0x7f   : > { %s912_s11 = smov %s733_s30  ;;  %s913_s12 = smov %s625_s14 }
  0x80   : > { %s914_s13 = smov %s629_s15  ;;  %s915_s14 = smov %s918_s19 }
  0x81   : > { %s916_s15 = smov %s922_s20  ;;  %20 = sbr.rel (!%p18_p2) target bundleno = 9 (0x9), region = 86 }
  0x88   :  { %274 = vsyncpa [#allocation3], 1 }
  0x89   :  { %276 = vsyncpa [#allocation3 + $0x1], 1 }
  0x8a   :  { %277 = vsyncpa [#allocation6], 1 }
  0x8b   :  { %279 = vsyncpa [#allocation6 + $0x1], 1 }
  0x8c   :  { %280 = vsyncpa [#allocation4], 1 }
  0x8d   :  { %282 = vsyncpa [#allocation4 + $0x1], 1 }

</bundles_post_ra>
